<compile_context>
chip_gen: v6e
topology: v6e:2x2x1
jax: 0.10.0
libtpu: 0.0.40
codegen_flags: <defaults>
</compile_context>

<pallas_src>
import jax
import jax.numpy as jnp
from jax.experimental import pallas as pl
from jax.experimental.pallas import tpu as pltpu

IN_FEATURES = 2
OUT_FEATURES = 15


def _feature_extractor_kernel(xT_ref, w_ref, b_ref, oT_ref):
    # xT_ref: (2, TB)  w_ref: (15, 2)  b_ref: (15, 1)  oT_ref: (15, TB)
    xT = xT_ref[...].astype(jnp.float32)          # lane-dense batch tile
    w = w_ref[...].astype(jnp.float32)
    b = b_ref[...].astype(jnp.float32)

    # Linear(2 -> 15) as two VPU multiply-adds; result is (15, TB) lane-dense.
    logits = w[:, 0:1] * xT[0:1, :] + w[:, 1:2] * xT[1:2, :] + b
    oT_ref[...] = jax.nn.sigmoid(logits).astype(oT_ref.dtype)


def _round_up(n, m):
    return (n + m - 1) // m * m


def feature_extractor_forward(x, w, b, *, block_batch=4096):
    """x: (B, 2) f32, w: (15, 2) f32 (PyTorch layout), b: (15,) f32 -> (B, 15)."""
    B = x.shape[0]
    # Batch tile: multiple of 128 (lane width). 4096 keeps double-buffered
    # tiles tiny, so it is safe on v5e/v6e/v7x alike.
    TB = min(block_batch, _round_up(B, 128))
    B_pad = _round_up(B, TB)

    # Layout plumbing in the wrapper: (B, 2) -> (2, B_pad), batch on lanes.
    xT = jnp.zeros((IN_FEATURES, B_pad), jnp.float32).at[:, :B].set(x.T)
    b2 = b.reshape(OUT_FEATURES, 1).astype(jnp.float32)

    outT = pl.pallas_call(
        _feature_extractor_kernel,
        out_shape=jax.ShapeDtypeStruct((OUT_FEATURES, B_pad), jnp.float32),
        grid_spec=pltpu.PrefetchScalarGridSpec(
            num_scalar_prefetch=0,
            grid=(B_pad // TB,),
            in_specs=[
                pl.BlockSpec((IN_FEATURES, TB), lambda i: (0, i)),
                # Constant block index -> loaded once, stays resident in VMEM.
                pl.BlockSpec((OUT_FEATURES, IN_FEATURES), lambda i: (0, 0)),
                pl.BlockSpec((OUT_FEATURES, 1), lambda i: (0, 0)),
            ],
            out_specs=pl.BlockSpec((OUT_FEATURES, TB), lambda i: (0, i)),
        ),
        compiler_params=pltpu.CompilerParams(
            dimension_semantics=("parallel",),   # megacore-shardable on v7x
        ),
    )(xT, w.astype(jnp.float32), b2)

    # Back to the PyTorch (B, 15) convention; drop batch padding.
    return outT[:, :B].T


def init_params(key):
    # PyTorch nn.Linear default init: U(-1/sqrt(fan_in), 1/sqrt(fan_in)).
    kw, kb = jax.random.split(key)
    bound = 1.0 / jnp.sqrt(jnp.float32(IN_FEATURES))
    w = jax.random.uniform(kw, (OUT_FEATURES, IN_FEATURES), jnp.float32, -bound, bound)
    b = jax.random.uniform(kb, (OUT_FEATURES,), jnp.float32, -bound, bound)
    return w, b


if __name__ == "__main__":
    key = jax.random.PRNGKey(0)
    k_x, k_p = jax.random.split(key)

    batch = 8
    x = jax.random.normal(k_x, (batch, IN_FEATURES), jnp.float32)
    w, b = init_params(k_p)

    out = feature_extractor_forward(x, w, b)
    out = jax.block_until_ready(out)

    # Reference: same math as PyTorch Linear(2,15) + Sigmoid.
    ref = jax.nn.sigmoid(x @ w.T + b[None, :])
    assert out.shape == (batch, OUT_FEATURES)
    assert jnp.allclose(out, ref, atol=1e-6, rtol=1e-6)

    # Also exercise a non-multiple-of-128, multi-tile batch (padding + grid > 1).
    batch2 = 300
    x2 = jax.random.normal(k_x, (batch2, IN_FEATURES), jnp.float32)
    out2 = jax.block_until_ready(
        feature_extractor_forward(x2, w, b, block_batch=128))
    ref2 = jax.nn.sigmoid(x2 @ w.T + b[None, :])
    assert out2.shape == (batch2, OUT_FEATURES)
    assert jnp.allclose(out2, ref2, atol=1e-6, rtol=1e-6)

    print("KERNEL_OK")
</pallas_src>

<mosaic_0001>
module attributes {stable_mosaic.version = 11 : i64} {
  func.func @_feature_extractor_kernel(%arg0: i32, %arg1: memref<2x128xf32, #tpu.memory_space<vmem>>, %arg2: memref<15x2xf32, #tpu.memory_space<vmem>>, %arg3: memref<15x1xf32, #tpu.memory_space<vmem>>, %arg4: memref<15x128xf32, #tpu.memory_space<vmem>>) attributes {dimension_semantics = [#tpu.dimension_semantics<parallel>], iteration_bounds = array<i64: 1>, scalar_prefetch = 0 : i64, scratch_operands = 0 : i64, tpu.core_type = #tpu.core_type<tc>, window_params = [{transform_indices = @transform_0, window_bounds = array<i64: 2, 128>}, {pipeline_mode = #tpu.pipeline_mode<synchronous>, transform_indices = @transform_1, window_bounds = array<i64: 15, 2>}, {pipeline_mode = #tpu.pipeline_mode<synchronous>, transform_indices = @transform_2, window_bounds = array<i64: 15, 1>}, {transform_indices = @transform_3, window_bounds = array<i64: 15, 128>}]} {
    %c0 = arith.constant 0 : index
    %c0_0 = arith.constant 0 : index
    %0 = vector.load %arg1[%c0, %c0_0] : memref<2x128xf32, #tpu.memory_space<vmem>>, vector<2x128xf32>
    %c0_1 = arith.constant 0 : index
    %c0_2 = arith.constant 0 : index
    %1 = vector.load %arg2[%c0_1, %c0_2] : memref<15x2xf32, #tpu.memory_space<vmem>>, vector<15x2xf32>
    %c0_3 = arith.constant 0 : index
    %c0_4 = arith.constant 0 : index
    %2 = vector.load %arg3[%c0_3, %c0_4] : memref<15x1xf32, #tpu.memory_space<vmem>>, vector<15x1xf32>
    %3 = vector.extract_strided_slice %1 {offsets = [0, 0], sizes = [15, 1], strides = [1, 1]} : vector<15x2xf32> to vector<15x1xf32>
    %4 = vector.extract_strided_slice %0 {offsets = [0, 0], sizes = [1, 128], strides = [1, 1]} : vector<2x128xf32> to vector<1x128xf32>
    %5 = vector.broadcast %3 : vector<15x1xf32> to vector<15x128xf32>
    %6 = vector.broadcast %4 : vector<1x128xf32> to vector<15x128xf32>
    %7 = arith.mulf %5, %6 : vector<15x128xf32>
    %8 = vector.extract_strided_slice %1 {offsets = [0, 1], sizes = [15, 1], strides = [1, 1]} : vector<15x2xf32> to vector<15x1xf32>
    %9 = vector.extract_strided_slice %0 {offsets = [1, 0], sizes = [1, 128], strides = [1, 1]} : vector<2x128xf32> to vector<1x128xf32>
    %10 = vector.broadcast %8 : vector<15x1xf32> to vector<15x128xf32>
    %11 = vector.broadcast %9 : vector<1x128xf32> to vector<15x128xf32>
    %12 = arith.mulf %10, %11 : vector<15x128xf32>
    %13 = arith.addf %7, %12 : vector<15x128xf32>
    %14 = vector.broadcast %2 : vector<15x1xf32> to vector<15x128xf32>
    %15 = arith.addf %13, %14 : vector<15x128xf32>
    %16 = arith.negf %15 : vector<15x128xf32>
    %17 = math.exp %16 : vector<15x128xf32>
    %cst = arith.constant 1.000000e+00 : f32
    %18 = vector.broadcast %cst : f32 to vector<15x128xf32>
    %19 = arith.addf %18, %17 : vector<15x128xf32>
    %20 = arith.divf %18, %19 : vector<15x128xf32>
    %c0_5 = arith.constant 0 : index
    %c0_6 = arith.constant 0 : index
    %21 = vector.load %arg4[%c0_5, %c0_6] : memref<15x128xf32, #tpu.memory_space<vmem>>, vector<15x128xf32>
    tpu.vector_store %arg4[%c0_5, %c0_6], %20 {strides = array<i32>} : memref<15x128xf32, #tpu.memory_space<vmem>>, vector<15x128xf32>,
    return
  }
  func.func @transform_0(%arg0: i32) -> (i32, i32) {
    %c0_i32 = arith.constant 0 : i32
    %c0_i32_0 = arith.constant 0 : i32
    return %c0_i32, %arg0 : i32, i32
  }
  func.func @transform_1(%arg0: i32) -> (i32, i32) {
    %c0_i32 = arith.constant 0 : i32
    %c0_i32_0 = arith.constant 0 : i32
    %c0_i32_1 = arith.constant 0 : i32
    return %c0_i32, %c0_i32_0 : i32, i32
  }
  func.func @transform_2(%arg0: i32) -> (i32, i32) {
    %c0_i32 = arith.constant 0 : i32
    %c0_i32_0 = arith.constant 0 : i32
    %c0_i32_1 = arith.constant 0 : i32
    return %c0_i32, %c0_i32_0 : i32, i32
  }
  func.func @transform_3(%arg0: i32) -> (i32, i32) {
    %c0_i32 = arith.constant 0 : i32
    %c0_i32_0 = arith.constant 0 : i32
    return %c0_i32, %arg0 : i32, i32
  }
}

</mosaic_0001>

<bundles_post_ra>
// kernel: tpu_custom_call.1
= control target key start
LH: loop header
LB: loop body
LE: loop exit
PB: predicated region body
PF: predicated region fallthrough
CT: control target
= control target key end

     0   :  { %v134_v1 = vmov 1   ;;  %v135_v2 = vmov 0   ;;  %s177_s0 = inlined_call_operand.vmem [shape: f32[2,128], index: 0, kind: input, shape index: {}]   ;;  %s178_s1 = inlined_call_operand.vmem [shape: f32[15,2], index: 1, kind: input, shape index: {}]   ;;  %s179_s2 = inlined_call_operand.vmem [shape: f32[15,1], index: 2, kind: input, shape index: {}]   ;;  %s180_s3 = inlined_call_operand.hbm [shape: f32[15,128], index: 3, kind: output, shape index: {}]  }
   0x1   :  { %v16_v0 = vld [vmem:[%s178_s1] sm:$0xff]  ;;  %102 = vset.pattern.permute.xlu1 %v134_v1  ;;  %101 = vset.pattern.permute.xlu0 %v135_v2 }
   0x2   :  { %8 = vsyncpa [#allocation3], 0  ;;  %37 = vperm.xlu1 %102, %v16_v0   ;;  %22 = vperm.xlu0 %101, %v16_v0   ;;  %v17_v3 = vld [vmem:[%s178_s1 + $0x8] sm:$0x7f]  ;;  %v18_v4 = vld [vmem:[%s179_s2] sm:$0xff]  ;;  %v30_v6 = vlaneseq }
   0x3   :  { %v19_v5 = vld [vmem:[%s179_s2 + $0x8] sm:$0x7f]  ;;  %v15_v10 = vld [vmem:[%s177_s0] sm:$0x3]  ;;  %s136_s0 = smov [#allocation2]  }
   0x4   :  { %v31_v7 = vshrl.u32 %v30_v6, 7  ;;  %s83_s1 = sshll.u32 %s136_s0, 4  ;;  %s84_s1 = int_to_ptr.vmem [resolvable:$true] %s83_s1 }
   0x5   :  { %s112_s2 = scalar_lea.vmem %s84_s1, 256  ;;  %p117_p1 = scmp.lt.s32.totalorder %s84_s1, %s84_s1 }
   0x6   :  { %41 = vperm.xlu1 %102, %v17_v3   ;;  %27 = vperm.xlu0 %101, %v17_v3   ;;  %v46_v8 = vsub.s32 1, %v31_v7  ;;  %v32_v9 = vsub.s32 0, %v31_v7  ;;  %p113_p0 = scmp.ne.s32.totalorder %s84_s1, %s112_s2  ;;  %p118_p2 = scmp.lt.s32.totalorder %s112_s2, %s112_s2 }
   0x8   :  { %v47_v11 = vrot.slane %v15_v10, %v46_v8  ;;  %v33_v12 = vrot.slane %v15_v10, %v32_v9  ;;  %p119_p3 = por %p118_p2, %p117_p1 }
   0xa   :  { %103 = vset.pattern.permute.xlu1 %v135_v2  ;;  %54 = vperm.xlu0 %101, %v18_v4   ;;  %p120_p4 = pnand %p119_p3, %p113_p0 }
   0xb   :  { %59 = vperm.xlu1 %103, %v19_v5  }
  0x7d   :  { %v38_v13 = vpop.permute.xlu1 %37  ;;  %v23_v14 = vpop.permute.xlu0 %22 }
  0x7e   :  { %v48_v15 = vmul.f32 %v47_v11, %v38_v13  ;;  %v34_v16 = vmul.f32 %v33_v12, %v23_v14 }
  0x80   :  { %v50_v21 = vadd.f32 %v48_v15, %v34_v16 }
  0x81   :  { %v42_v17 = vpop.permute.xlu1 %41  ;;  %v28_v18 = vpop.permute.xlu0 %27 }
  0x82   :  { %v49_v19 = vmul.f32 %v47_v11, %v42_v17  ;;  %v35_v20 = vmul.f32 %v33_v12, %v28_v18 }
  0x84   :  { %v51_v22 = vadd.f32 %v49_v19, %v35_v20 }
  0x85   :  { %v55_v23 = vpop.permute.xlu0 %54 }
  0x86   :  { %v62_v24 = vadd.f32 %v55_v23, %v50_v21  ;;  %v60_v25 = vpop.permute.xlu1 %59 }
  0x87   :  { %v63_v26 = vadd.f32 %v60_v25, %v51_v22 }
  0x88   :  { %v94_v27 = vmul.f32 -1.442695, %v62_v24 }
  0x89   :  { %v95_v28 = vmul.f32 -1.442695, %v63_v26 }
  0x8a   :  { %104 = vpow2.f32 %v94_v27 }
  0x8b   :  { %106 = vpow2.f32 %v95_v28 }
  0x97   :  { %v105_v29 = vpop.eup %104 }
  0x98   :  { %v107_v30 = vpop.eup %106  ;;  %v70_v31 = vadd.f32 1.0, %v105_v29 }
  0x99   :  { %v71_v32 = vadd.f32 1.0, %v107_v30 }
  0x9a   :  { %108 = vrcp.f32 %v70_v31 }
  0x9b   :  { %110 = vrcp.f32 %v71_v32 }
  0xa7   :  { %v109_v33 = vpop.eup %108 }
  0xa8   :  { %v111_v34 = vpop.eup %110  ;;  %76 = vst [vmem:[#allocation2] sm:$0xff] %v109_v33 }
  0xa9   :  { %77 = vst [vmem:[#allocation2 + $0x8] sm:$0x7f] %v111_v34 }
  0xaa   :  { %123 = shalt.err (!%p120_p4)
}
  0xab   :  { %s137_s22 = smov 128   ;;  %s138_s23 = smov 8  }
  0xac   :  { %89 = dma.vmem_to_hbm [thread:$0]  %s84_s1, 256, %s180_s3, [#allocation3], %s137_s22, %s137_s22, %s138_s23  }
  0xad   :  { %132 = dma.done.wait [#allocation3], 256  }
  0xae   :  { %133 = vsyncadd [#allocation3], 4294967040 }
  0xaf   :  { %93 = vsyncpa [#allocation3], 1 }

</bundles_post_ra>
